<compile_context>
chip_gen: v7x
topology: tpu7x:2x2x1
jax: 0.10.0
libtpu: 0.0.40
codegen_flags: <defaults>
</compile_context>

<pallas_src>
import functools

import jax
import jax.numpy as jnp
from jax.experimental import pallas as pl
from jax.experimental.pallas import tpu as pltpu

_LANE = 128  # TPU lane width


def _round_up(x: int, m: int) -> int:
    return (x + m - 1) // m * m


def _cdiv(a: int, b: int) -> int:
    return (a + b - 1) // b


def _default_vmem_limit() -> int:
    """Explicit scoped-VMEM budget (the default is only 16/32 MiB)."""
    cap = 128 * 1024 * 1024
    try:  # 64 MiB on v7x, 128 MiB on v5e/v6e
        cap = int(pltpu.get_tpu_info().vmem_capacity_bytes)
    except Exception:
        pass
    # Leave headroom for Mosaic's internal scratch.
    return int(min(100 * 1024 * 1024, 0.8 * cap))


def _fused_vmem_estimate(Np, Mp, Cin_p, Ch_p, Co_p) -> int:
    """Rough upper bound on the fused kernel's resident VMEM footprint."""
    h = Np * Mp * (1 + 2)                 # int8 H + in-kernel bf16 upcast copy
    x = Np * Cin_p * 2                    # X bf16
    acts = Np * (Ch_p * 8 + Co_p * 8)     # x1 / hid / out f32 + bf16 transients
    y = Mp * max(Ch_p, Co_p) * 6          # y f32 + bf16
    w = (Cin_p * Ch_p + Ch_p * Co_p) * 2 + (Ch_p + Co_p) * 4 + Mp * 4
    return h + x + acts + y + w


# ---------------------------------------------------------------------------
# Kernels
# ---------------------------------------------------------------------------

def _fused_kernel(x_ref, w1_ref, b1_ref, w2_ref, b2_ref, h_ref, inv_de_ref,
                  eps_ref, o_ref):
    """Both UniGINConv layers fused; whole (padded) graph resident in VMEM."""
    h_bf = h_ref[...].astype(jnp.bfloat16)        # int8 0/1 -> bf16 (exact), reused 4x
    inv_de = inv_de_ref[...]                       # (Mp, 1) f32
    one_eps = 1.0 + eps_ref[0, 0]                  # SMEM scalar

    def conv(x_bf, w_bf, b, relu):
        # theta (Linear):  X1 = X @ W + b                    -> (Np, C) f32
        x1 = jnp.dot(x_bf, w_bf, preferred_element_type=jnp.float32) + b
        # v2e "mean":  Y = D_e^{-1} (H^T X1).  Transposed MXU contraction —
        # no transposed / f32 copy of H is ever materialized; the mean
        # normalization is applied post-matmul in f32.
        y = jax.lax.dot_general(
            h_bf, x1.astype(jnp.bfloat16),
            dimension_numbers=(((0,), (0,)), ((), ())),
            preferred_element_type=jnp.float32)              # (Mp, C)
        y = (y * inv_de).astype(jnp.bfloat16)
        # e2v "sum" + GIN update:  X2 = (1 + eps) X1 + H Y
        agg = jnp.dot(h_bf, y, preferred_element_type=jnp.float32)
        out = one_eps * x1 + agg
        return jnp.maximum(out, 0.0) if relu else out

    hid = conv(x_ref[...], w1_ref[...], b1_ref[...], relu=True)
    o_ref[...] = conv(hid.astype(jnp.bfloat16), w2_ref[...], b2_ref[...],
                      relu=False)


def _phase1_kernel(x_ref, w_ref, b_ref, h_ref, inv_de_ref, x1_ref, y_ref):
    """Tiled phase 1 (per layer): theta + accumulate Y = D_e^{-1} H^T X1.

    Grid axis = vertex-row tiles ('arbitrary'); y_ref is a resident (Mp, C)
    accumulator (same block index every step, pl.when init / finalize).
    """
    i = pl.program_id(0)

    x1 = jnp.dot(x_ref[...], w_ref[...],
                 preferred_element_type=jnp.float32) + b_ref[...]
    x1_ref[...] = x1

    h_bf = h_ref[...].astype(jnp.bfloat16)        # int8 0/1 -> bf16 (exact)
    contrib = jax.lax.dot_general(                 # this tile's H^T @ X1
        h_bf, x1.astype(jnp.bfloat16),
        dimension_numbers=(((0,), (0,)), ((), ())),
        preferred_element_type=jnp.float32)        # (Mp, C)

    @pl.when(i == 0)
    def _():
        y_ref[...] = jnp.zeros_like(y_ref)

    y_ref[...] += contrib

    @pl.when(i == pl.num_programs(0) - 1)
    def _():
        y_ref[...] *= inv_de_ref[...]              # "mean" normalization, f32


def _phase2_kernel(x1_ref, h_ref, y_ref, eps_ref, o_ref, *, relu):
    """Tiled phase 2 (per layer): e2v sum + GIN update (+ optional ReLU)."""
    h_bf = h_ref[...].astype(jnp.bfloat16)
    agg = jnp.dot(h_bf, y_ref[...], preferred_element_type=jnp.float32)
    out = (1.0 + eps_ref[0, 0]) * x1_ref[...] + agg
    if relu:
        out = jnp.maximum(out, 0.0)
    o_ref[...] = out.astype(o_ref.dtype)


# ---------------------------------------------------------------------------
# Wrappers
# ---------------------------------------------------------------------------

def prepare_hypergraph(H, *, tile_m: int | None = None):
    """Graph-static preprocessing — run ONCE per hypergraph and reuse.

    Pads (N, M) to lane/tile-friendly (Np, Mp), stores the incidence matrix
    as int8 (0/1 exact) and builds the (Mp, 1) f32 inverse hyperedge-degree
    vector.  Zero padding is inert: padded vertices have all-zero H rows,
    padded hyperedges have all-zero H columns and inv_deg = 0.
    """
    H = jnp.asarray(H, jnp.float32)
    N, M = H.shape
    if tile_m is None:
        n_tiles = max(1, _cdiv(N, 512))            # target >=512-row tiles
        tile_m = _round_up(_cdiv(N, n_tiles), 32)
    else:
        tile_m = _round_up(int(tile_m), 32)
    Np = _round_up(N, tile_m)
    Mp = _round_up(M, _LANE)

    Hp = jnp.zeros((Np, Mp), jnp.int8).at[:N, :M].set(H.astype(jnp.int8))
    deg_e = jnp.sum(H, axis=0)
    inv_de = jnp.where(deg_e > 0.0, 1.0 / jnp.maximum(deg_e, 1.0), 0.0)
    inv_de_p = jnp.zeros((Mp, 1), jnp.float32).at[:M, 0].set(inv_de)
    return {"H": Hp, "inv_de": inv_de_p, "n": N, "m": M, "tile_m": tile_m}


def _unigin_layer_tiled(x_bf, Hp, inv_de, W_bf, b, eps_arr, *, tile_m, relu,
                        out_dtype, vmem_limit):
    """One UniGINConv layer as a two-phase vertex-row-tiled grid."""
    Np, Mp = Hp.shape
    Cin = x_bf.shape[1]
    C = W_bf.shape[1]
    n_tiles = Np // tile_m

    # Phase 1: X1 tiles + resident Y accumulator (reduction axis 'arbitrary').
    x1, y = pl.pallas_call(
        _phase1_kernel,
        out_shape=(jax.ShapeDtypeStruct((Np, C), jnp.float32),
                   jax.ShapeDtypeStruct((Mp, C), jnp.float32)),
        grid=(n_tiles,),
        in_specs=[
            pl.BlockSpec((tile_m, Cin), lambda i: (i, 0)),   # X tile
            pl.BlockSpec((Cin, C), lambda i: (0, 0)),        # W
            pl.BlockSpec((1, C), lambda i: (0, 0)),          # b
            pl.BlockSpec((tile_m, Mp), lambda i: (i, 0)),    # H tile (int8)
            pl.BlockSpec((Mp, 1), lambda i: (0, 0)),         # inv_de
        ],
        out_specs=(
            pl.BlockSpec((tile_m, C), lambda i: (i, 0)),     # X1 tile
            pl.BlockSpec((Mp, C), lambda i: (0, 0)),         # Y (resident acc)
        ),
        compiler_params=pltpu.CompilerParams(
            dimension_semantics=("arbitrary",),
            vmem_limit_bytes=vmem_limit),
    )(x_bf, W_bf, b, Hp, inv_de)

    y_bf = y.astype(jnp.bfloat16)   # one small (Mp, C) cast; << H traffic

    # Phase 2: independent vertex tiles ('parallel' -> megacore split on v7x).
    out = pl.pallas_call(
        functools.partial(_phase2_kernel, relu=relu),
        out_shape=jax.ShapeDtypeStruct((Np, C), out_dtype),
        grid=(n_tiles,),
        in_specs=[
            pl.BlockSpec((tile_m, C), lambda i: (i, 0)),        # X1 tile
            pl.BlockSpec((tile_m, Mp), lambda i: (i, 0)),       # H tile (int8)
            pl.BlockSpec((Mp, C), lambda i: (0, 0)),            # Y (bf16)
            pl.BlockSpec(memory_space=pltpu.MemorySpace.SMEM),  # eps scalar
        ],
        out_specs=pl.BlockSpec((tile_m, C), lambda i: (i, 0)),
        compiler_params=pltpu.CompilerParams(
            dimension_semantics=("parallel",),
            vmem_limit_bytes=vmem_limit),
    )(x1, Hp, y_bf, eps_arr)
    return out


def unigin_forward(X, graph, params, *, eps: float = 0.0, force_tiled=None):
    """UniGIN forward: two UniGINConv layers.

    graph: output of prepare_hypergraph (hoisted, graph-static).
    force_tiled: None = auto (VMEM estimate), False = fused, True = tiled.
    """
    Hp, inv_de = graph["H"], graph["inv_de"]
    N, tile_m = graph["n"], graph["tile_m"]
    Np, Mp = Hp.shape
    Cin = X.shape[1]
    Chid = params["W1"].shape[1]
    Cout = params["W2"].shape[1]
    Cin_p, Ch_p, Co_p = (_round_up(c, _LANE) for c in (Cin, Chid, Cout))

    # Lane-dense zero padding (inert; padded channels have zero weights/bias).
    Xp = jnp.zeros((Np, Cin_p), jnp.bfloat16).at[:N, :Cin].set(
        X.astype(jnp.bfloat16))
    W1p = jnp.zeros((Cin_p, Ch_p), jnp.bfloat16).at[:Cin, :Chid].set(
        params["W1"].astype(jnp.bfloat16))
    b1p = jnp.zeros((1, Ch_p), jnp.float32).at[:, :Chid].set(params["b1"])
    W2p = jnp.zeros((Ch_p, Co_p), jnp.bfloat16).at[:Chid, :Cout].set(
        params["W2"].astype(jnp.bfloat16))
    b2p = jnp.zeros((1, Co_p), jnp.float32).at[:, :Cout].set(params["b2"])
    eps_arr = jnp.full((1, 1), eps, jnp.float32)   # SMEM scalar (train_eps OK)

    vmem_limit = _default_vmem_limit()
    est = _fused_vmem_estimate(Np, Mp, Cin_p, Ch_p, Co_p)
    use_fused = (force_tiled is False) or (
        force_tiled is None and est <= int(0.6 * vmem_limit))

    if use_fused:
        # Grid-less call: whole arrays, single-buffered in VMEM, H read once.
        out = pl.pallas_call(
            _fused_kernel,
            out_shape=jax.ShapeDtypeStruct((Np, Co_p), jnp.float32),
            in_specs=[
                pl.BlockSpec(memory_space=pltpu.MemorySpace.VMEM),   # X
                pl.BlockSpec(memory_space=pltpu.MemorySpace.VMEM),   # W1
                pl.BlockSpec(memory_space=pltpu.MemorySpace.VMEM),   # b1
                pl.BlockSpec(memory_space=pltpu.MemorySpace.VMEM),   # W2
                pl.BlockSpec(memory_space=pltpu.MemorySpace.VMEM),   # b2
                pl.BlockSpec(memory_space=pltpu.MemorySpace.VMEM),   # H int8
                pl.BlockSpec(memory_space=pltpu.MemorySpace.VMEM),   # inv_de
                pl.BlockSpec(memory_space=pltpu.MemorySpace.SMEM),   # eps
            ],
            out_specs=pl.BlockSpec(memory_space=pltpu.MemorySpace.VMEM),
            compiler_params=pltpu.CompilerParams(
                vmem_limit_bytes=vmem_limit),
        )(Xp, W1p, b1p, W2p, b2p, Hp, inv_de, eps_arr)
    else:
        hid = _unigin_layer_tiled(Xp, Hp, inv_de, W1p, b1p, eps_arr,
                                  tile_m=tile_m, relu=True,
                                  out_dtype=jnp.bfloat16,
                                  vmem_limit=vmem_limit)
        out = _unigin_layer_tiled(hid, Hp, inv_de, W2p, b2p, eps_arr,
                                  tile_m=tile_m, relu=False,
                                  out_dtype=jnp.float32,
                                  vmem_limit=vmem_limit)
    return out[:N, :Cout]


# ---------------------------------------------------------------------------
# Reference + params
# ---------------------------------------------------------------------------

def _unigin_reference(X, H, params, *, eps: float = 0.0):
    """Pure-JAX reference mirroring the kernels' bf16/f32 mixed precision."""
    h_bf = H.astype(jnp.bfloat16)                               # 0/1 exact
    deg_e = jnp.sum(H, axis=0, keepdims=True)
    inv_de = jnp.where(deg_e > 0.0, 1.0 / jnp.maximum(deg_e, 1.0), 0.0)

    def conv(x_bf, W, b, relu):
        x1 = jnp.dot(x_bf, W.astype(jnp.bfloat16),
                     preferred_element_type=jnp.float32) + b
        y = jax.lax.dot_general(h_bf, x1.astype(jnp.bfloat16),
                                dimension_numbers=(((0,), (0,)), ((), ())),
                                preferred_element_type=jnp.float32)
        y = (y * inv_de.T).astype(jnp.bfloat16)
        agg = jnp.dot(h_bf, y, preferred_element_type=jnp.float32)
        out = (1.0 + eps) * x1 + agg
        return jnp.maximum(out, 0.0) if relu else out

    hid = conv(X.astype(jnp.bfloat16), params["W1"], params["b1"], True)
    return conv(hid.astype(jnp.bfloat16), params["W2"], params["b2"], False)


def init_params(key, in_channels, hid_channels, num_classes):
    """PyTorch-style Linear init (uniform +-1/sqrt(fan_in))."""
    k1, k2, k3, k4 = jax.random.split(key, 4)
    lim1 = 1.0 / jnp.sqrt(in_channels)
    lim2 = 1.0 / jnp.sqrt(hid_channels)
    return {
        # weights stored pre-transposed as (Cin, Cout) so kernels do X @ W
        "W1": jax.random.uniform(k1, (in_channels, hid_channels),
                                 jnp.float32, -lim1, lim1),
        "b1": jax.random.uniform(k2, (1, hid_channels),
                                 jnp.float32, -lim1, lim1),
        "W2": jax.random.uniform(k3, (hid_channels, num_classes),
                                 jnp.float32, -lim2, lim2),
        "b2": jax.random.uniform(k4, (1, num_classes),
                                 jnp.float32, -lim2, lim2),
    }


if __name__ == "__main__":
    key = jax.random.PRNGKey(0)
    k_x, k_h, k_p = jax.random.split(key, 3)

    N = 80            # vertices
    M = 48            # hyperedges
    C_in = 16
    C_hid = 32
    N_classes = 4

    X = jax.random.normal(k_x, (N, C_in), jnp.float32)
    # Random 0/1 incidence matrix; guarantee every hyperedge is non-empty.
    H = (jax.random.uniform(k_h, (N, M)) < 0.2).astype(jnp.float32)
    H = H.at[jnp.arange(M) % N, jnp.arange(M)].set(1.0)

    params = init_params(k_p, C_in, C_hid, N_classes)
    ref = _unigin_reference(X, H, params, eps=0.0)

    # Fused fast path (whole padded graph resident in VMEM, H read once).
    graph = prepare_hypergraph(H)
    out_fused = jax.block_until_ready(
        unigin_forward(X, graph, params, eps=0.0, force_tiled=False))

    # Tiled path (vertex-row tiles; exercised here with tiny 32-row tiles).
    graph_tiled = prepare_hypergraph(H, tile_m=32)
    out_tiled = jax.block_until_ready(
        unigin_forward(X, graph_tiled, params, eps=0.0, force_tiled=True))

    for out in (out_fused, out_tiled):
        assert out.shape == (N, N_classes) and out.dtype == jnp.float32
        assert bool(jnp.all(jnp.isfinite(out)))
        assert bool(jnp.allclose(out, ref, rtol=5e-2, atol=5e-2)), (
            float(jnp.max(jnp.abs(out - ref))))
    print("KERNEL_OK")
</pallas_src>

<mosaic_0001>
module attributes {stable_mosaic.version = 11 : i64} {
  func.func @_fused_kernel(%arg0: memref<96x128xbf16, #tpu.memory_space<vmem>>, %arg1: memref<128x128xbf16, #tpu.memory_space<vmem>>, %arg2: memref<1x128xf32, #tpu.memory_space<vmem>>, %arg3: memref<128x128xbf16, #tpu.memory_space<vmem>>, %arg4: memref<1x128xf32, #tpu.memory_space<vmem>>, %arg5: memref<96x128xi8, #tpu.memory_space<vmem>>, %arg6: memref<128x1xf32, #tpu.memory_space<vmem>>, %arg7: memref<1x1xf32, #tpu.memory_space<smem>>, %arg8: memref<96x128xf32, #tpu.memory_space<vmem>>) attributes {dimension_semantics = [], scalar_prefetch = 0 : i64, scratch_operands = 0 : i64, tpu.core_type = #tpu.core_type<tc>} {
    %c0 = arith.constant 0 : index
    %c0_0 = arith.constant 0 : index
    %0 = vector.load %arg5[%c0, %c0_0] : memref<96x128xi8, #tpu.memory_space<vmem>>, vector<96x128xi8>
    %1 = arith.sitofp %0 : vector<96x128xi8> to vector<96x128xbf16>
    %c0_1 = arith.constant 0 : index
    %c0_2 = arith.constant 0 : index
    %2 = vector.load %arg6[%c0_1, %c0_2] : memref<128x1xf32, #tpu.memory_space<vmem>>, vector<128x1xf32>
    %c0_3 = arith.constant 0 : index
    %c0_4 = arith.constant 0 : index
    %3 = memref.load %arg7[%c0_3, %c0_4] : memref<1x1xf32, #tpu.memory_space<smem>>
    %cst = arith.constant 1.000000e+00 : f32
    %4 = arith.addf %cst, %3 : f32
    %c0_5 = arith.constant 0 : index
    %c0_6 = arith.constant 0 : index
    %5 = vector.load %arg0[%c0_5, %c0_6] : memref<96x128xbf16, #tpu.memory_space<vmem>>, vector<96x128xbf16>
    %c0_7 = arith.constant 0 : index
    %c0_8 = arith.constant 0 : index
    %6 = vector.load %arg1[%c0_7, %c0_8] : memref<128x128xbf16, #tpu.memory_space<vmem>>, vector<128x128xbf16>
    %c0_9 = arith.constant 0 : index
    %c0_10 = arith.constant 0 : index
    %7 = vector.load %arg2[%c0_9, %c0_10] : memref<1x128xf32, #tpu.memory_space<vmem>>, vector<1x128xf32>
    %cst_11 = arith.constant dense<0.000000e+00> : vector<96x128xf32>
    %8 = tpu.matmul %5, %6, %cst_11 {dimension_numbers = #tpu.dot_dimension_numbers<[1], [0], [0], [1], [0, 0, 1, 1], [], []>} : vector<96x128xbf16>, vector<128x128xbf16>, vector<96x128xf32> -> vector<96x128xf32>
    %9 = vector.broadcast %7 : vector<1x128xf32> to vector<96x128xf32>
    %10 = arith.addf %8, %9 : vector<96x128xf32>
    %11 = arith.truncf %10 : vector<96x128xf32> to vector<96x128xbf16>
    %cst_12 = arith.constant dense<0.000000e+00> : vector<128x128xf32>
    %12 = tpu.matmul %1, %11, %cst_12 {dimension_numbers = #tpu.dot_dimension_numbers<[0], [0], [1], [1], [0, 1, 1, 1], [], []>} : vector<96x128xbf16>, vector<96x128xbf16>, vector<128x128xf32> -> vector<128x128xf32>
    %13 = vector.broadcast %2 : vector<128x1xf32> to vector<128x128xf32>
    %14 = arith.mulf %12, %13 : vector<128x128xf32>
    %15 = arith.truncf %14 : vector<128x128xf32> to vector<128x128xbf16>
    %cst_13 = arith.constant dense<0.000000e+00> : vector<96x128xf32>
    %16 = tpu.matmul %1, %15, %cst_13 {dimension_numbers = #tpu.dot_dimension_numbers<[1], [0], [0], [1], [0, 0, 1, 1], [], []>} : vector<96x128xbf16>, vector<128x128xbf16>, vector<96x128xf32> -> vector<96x128xf32>
    %17 = vector.broadcast %4 : f32 to vector<96x128xf32>
    %18 = arith.mulf %17, %10 : vector<96x128xf32>
    %19 = arith.addf %18, %16 : vector<96x128xf32>
    %cst_14 = arith.constant 0.000000e+00 : f32
    %20 = vector.broadcast %cst_14 : f32 to vector<96x128xf32>
    %21 = arith.maximumf %19, %20 : vector<96x128xf32>
    %22 = arith.truncf %21 : vector<96x128xf32> to vector<96x128xbf16>
    %c0_15 = arith.constant 0 : index
    %c0_16 = arith.constant 0 : index
    %23 = vector.load %arg3[%c0_15, %c0_16] : memref<128x128xbf16, #tpu.memory_space<vmem>>, vector<128x128xbf16>
    %c0_17 = arith.constant 0 : index
    %c0_18 = arith.constant 0 : index
    %24 = vector.load %arg4[%c0_17, %c0_18] : memref<1x128xf32, #tpu.memory_space<vmem>>, vector<1x128xf32>
    %cst_19 = arith.constant dense<0.000000e+00> : vector<96x128xf32>
    %25 = tpu.matmul %22, %23, %cst_19 {dimension_numbers = #tpu.dot_dimension_numbers<[1], [0], [0], [1], [0, 0, 1, 1], [], []>} : vector<96x128xbf16>, vector<128x128xbf16>, vector<96x128xf32> -> vector<96x128xf32>
    %26 = vector.broadcast %24 : vector<1x128xf32> to vector<96x128xf32>
    %27 = arith.addf %25, %26 : vector<96x128xf32>
    %28 = arith.truncf %27 : vector<96x128xf32> to vector<96x128xbf16>
    %cst_20 = arith.constant dense<0.000000e+00> : vector<128x128xf32>
    %29 = tpu.matmul %1, %28, %cst_20 {dimension_numbers = #tpu.dot_dimension_numbers<[0], [0], [1], [1], [0, 1, 1, 1], [], []>} : vector<96x128xbf16>, vector<96x128xbf16>, vector<128x128xf32> -> vector<128x128xf32>
    %30 = vector.broadcast %2 : vector<128x1xf32> to vector<128x128xf32>
    %31 = arith.mulf %29, %30 : vector<128x128xf32>
    %32 = arith.truncf %31 : vector<128x128xf32> to vector<128x128xbf16>
    %cst_21 = arith.constant dense<0.000000e+00> : vector<96x128xf32>
    %33 = tpu.matmul %1, %32, %cst_21 {dimension_numbers = #tpu.dot_dimension_numbers<[1], [0], [0], [1], [0, 0, 1, 1], [], []>} : vector<96x128xbf16>, vector<128x128xbf16>, vector<96x128xf32> -> vector<96x128xf32>
    %34 = vector.broadcast %4 : f32 to vector<96x128xf32>
    %35 = arith.mulf %34, %27 : vector<96x128xf32>
    %36 = arith.addf %35, %33 : vector<96x128xf32>
    %c0_22 = arith.constant 0 : index
    %c0_23 = arith.constant 0 : index
    %37 = vector.load %arg8[%c0_22, %c0_23] : memref<96x128xf32, #tpu.memory_space<vmem>>, vector<96x128xf32>
    tpu.vector_store %arg8[%c0_22, %c0_23], %36 {strides = array<i32>} : memref<96x128xf32, #tpu.memory_space<vmem>>, vector<96x128xf32>,
    return
  }
}

</mosaic_0001>

<bundles_post_ra>
// kernel: tpu_custom_call.1
= control target key start
LH: loop header
LB: loop body
LE: loop exit
PB: predicated region body
PF: predicated region fallthrough
CT: control target
= control target key end

     0   :  { %14 = vsyncpa [#allocation4], 0  ;;  %s2099_s0 = inlined_call_operand.hbm [shape: bf16[96,128], index: 0, kind: input, shape index: {}]   ;;  %s2100_s1 = inlined_call_operand.hbm [shape: bf16[128,128], index: 1, kind: input, shape index: {}]   ;;  %s2101_s2 = inlined_call_operand.hbm [shape: f32[1,128], index: 2, kind: input, shape index: {}]   ;;  %s2102_s3 = inlined_call_operand.hbm [shape: bf16[128,128], index: 3, kind: input, shape index: {}]   ;;  %s2103_s4 = inlined_call_operand.hbm [shape: f32[1,128], index: 4, kind: input, shape index: {}]   ;;  %s2104_s5 = inlined_call_operand.hbm [shape: s8[96,128], index: 5, kind: input, shape index: {}]   ;;  %s2105_s6 = inlined_call_operand.hbm [shape: f32[128,1], index: 6, kind: input, shape index: {}]   ;;  %s2106_s7 = inlined_call_operand.<no memory space> [shape: f32[1,1], index: 7, kind: input, shape index: {}]   ;;  %s2107_s8 = inlined_call_operand.hbm [shape: f32[96,128], index: 8, kind: output, shape index: {}]  }
   0x1   :  { %15 = vsyncpa [#allocation7], 0 }
   0x2   :  { %16 = vsyncpa [#allocation10], 0 }
   0x3   :  { %17 = vsyncpa [#allocation13], 0 }
   0x4   :  { %18 = vsyncpa [#allocation5], 0  ;;  %s1653_s27 = smov [#allocation6]   ;;  %s1654_s29 = smov [#allocation9]  }
   0x5   :  { %s36_s28 = sshll.u32 %s1653_s27, 4  ;;  %s58_s30 = sshll.u32 %s1654_s29, 4  ;;  %s37_s28 = int_to_ptr.vmem [resolvable:$true] %s36_s28  ;;  %s1711_s30 = int_to_ptr.vmem [resolvable:$true] %s58_s30 }
   0x6   :  { %s1467_s11 = scalar_lea.hbm %s2100_s1, 1024 }
   0x7   :  { %p1468_p0 = scmp.ne.s32.totalorder %s2100_s1, %s1467_s11  ;;  %p1471_p1 = scmp.lt.u32.totalorder %s1467_s11, %s2100_s1 }
   0x9   :  { %p1473_p2 = pnand %p1471_p1, %p1468_p0 }
   0xb   :  { %1476 = shalt.err (!%p1473_p2)
}
   0xc   :  { %s1477_s16 = scalar_lea.vmem %s37_s28, 1024  ;;  %p1482_p4 = scmp.lt.s32.totalorder %s37_s28, %s37_s28 }
   0xd   :  { %p1478_p3 = scmp.ne.s32.totalorder %s37_s28, %s1477_s16  ;;  %p1483_p5 = scmp.lt.s32.totalorder %s1477_s16, %s1477_s16 }
   0xf   :  { %p1484_p6 = por %p1483_p5, %p1482_p4 }
  0x11   :  { %p1485_p7 = pnand %p1484_p6, %p1478_p3 }
  0x13   :  { %1488 = shalt.err (!%p1485_p7)
}
  0x14   :  { %s1655_s17 = smov 64   ;;  %s1656_s18 = smov 4  }
  0x15   :  { %42 = dma.hbm_to_vmem [thread:$0]  %s2100_s1, 1024, %s37_s28, [#allocation7], %s1655_s17, %s1655_s17, %s1656_s18  }
  0x16   :  { %s1489_s23 = scalar_lea.hbm %s2102_s3, 1024 }
  0x17   :  { %p1490_p8 = scmp.ne.s32.totalorder %s2102_s3, %s1489_s23  ;;  %p1493_p9 = scmp.lt.u32.totalorder %s1489_s23, %s2102_s3 }
  0x19   :  { %p1495_p10 = pnand %p1493_p9, %p1490_p8 }
  0x1b   :  { %1498 = shalt.err (!%p1495_p10)
}
  0x1c   :  { %s1499_s29 = scalar_lea.vmem %s1711_s30, 1024  ;;  %p1504_p12 = scmp.lt.s32.totalorder %s1711_s30, %s1711_s30 }
  0x1d   :  { %p1500_p11 = scmp.ne.s32.totalorder %s1711_s30, %s1499_s29  ;;  %p1505_p13 = scmp.lt.s32.totalorder %s1499_s29, %s1499_s29 }
  0x1f   :  { %p1506_p0 = por %p1505_p13, %p1504_p12 }
  0x21   :  { %p1507_p1 = pnand %p1506_p0, %p1500_p11 }
  0x23   :  { %1510 = shalt.err (!%p1507_p1)
}
  0x24   :  { %64 = dma.hbm_to_vmem [thread:$0]  %s2102_s3, 1024, %s1711_s30, [#allocation10], %s1655_s17, %s1655_s17, %s1656_s18  }
  0x25   :  { %s1657_s9 = smov [#allocation12]   ;;  %s1511_s13 = scalar_lea.hbm %s2104_s5, 384 }
  0x26   :  { %s80_s10 = sshll.u32 %s1657_s9, 4  ;;  %p1512_p2 = scmp.ne.s32.totalorder %s2104_s5, %s1511_s13  ;;  %s81_s10 = int_to_ptr.vmem [resolvable:$true] %s80_s10 }
  0x27   :  { %p1515_p3 = scmp.lt.u32.totalorder %s1511_s13, %s2104_s5 }
  0x29   :  { %p1517_p4 = pnand %p1515_p3, %p1512_p2 }
  0x2b   :  { %1520 = shalt.err (!%p1517_p4)
}
  0x2c   :  { %s1521_s20 = scalar_lea.vmem %s81_s10, 384  ;;  %p1526_p6 = scmp.lt.s32.totalorder %s81_s10, %s81_s10 }
  0x2d   :  { %p1522_p5 = scmp.ne.s32.totalorder %s81_s10, %s1521_s20  ;;  %p1527_p7 = scmp.lt.s32.totalorder %s1521_s20, %s1521_s20 }
  0x2f   :  { %p1528_p8 = por %p1527_p7, %p1526_p6 }
  0x31   :  { %p1529_p9 = pnand %p1528_p8, %p1522_p5 }
  0x33   :  { %1532 = shalt.err (!%p1529_p9)
}
  0x34   :  { %s1658_s3 = smov 128   ;;  %s1659_s30 = smov 8  }
  0x35   :  { %86 = dma.hbm_to_vmem [thread:$0]  %s2104_s5, 384, %s81_s10, [#allocation13], %s1658_s3, %s1658_s3, %s1659_s30  }
  0x36   :  { %s1660_s23 = smov [#allocation3]   ;;  %s1661_s25 = smov [#allocation8]  }
  0x37   :  { %s24_s24 = sshll.u32 %s1660_s23, 4  ;;  %s49_s26 = sshll.u32 %s1661_s25, 4  ;;  %s25_s24 = int_to_ptr.vmem [resolvable:$true] %s24_s24  ;;  %s50_s26 = int_to_ptr.vmem [resolvable:$true] %s49_s26 }
  0x38   :  { %s1533_s1 = scalar_lea.hbm %s2099_s0, 768 }
  0x39   :  { %p1534_p10 = scmp.ne.s32.totalorder %s2099_s0, %s1533_s1  ;;  %p1537_p11 = scmp.lt.u32.totalorder %s1533_s1, %s2099_s0 }
  0x3b   :  { %p1539_p12 = pnand %p1537_p11, %p1534_p10 }
  0x3d   :  { %1542 = shalt.err (!%p1539_p12)
}
  0x3e   :  { %s1543_s5 = scalar_lea.vmem %s25_s24, 768  ;;  %p1548_p0 = scmp.lt.s32.totalorder %s25_s24, %s25_s24 }
  0x3f   :  { %p1544_p13 = scmp.ne.s32.totalorder %s25_s24, %s1543_s5  ;;  %p1549_p1 = scmp.lt.s32.totalorder %s1543_s5, %s1543_s5 }
  0x41   :  { %p1550_p2 = por %p1549_p1, %p1548_p0 }
  0x43   :  { %p1551_p3 = pnand %p1550_p2, %p1544_p13 }
  0x45   :  { %1554 = shalt.err (!%p1551_p3)
}
  0x46   :  { %30 = dma.hbm_to_vmem [thread:$0]  %s2099_s0, 768, %s25_s24, [#allocation4], %s1655_s17, %s1655_s17, %s1656_s18  }
  0x47   :  { %s1555_s16 = scalar_lea.hbm %s2101_s2, 16 }
  0x48   :  { %p1556_p4 = scmp.ne.s32.totalorder %s2101_s2, %s1555_s16  ;;  %p1559_p5 = scmp.lt.u32.totalorder %s1555_s16, %s2101_s2 }
  0x4a   :  { %p1561_p6 = pnand %p1559_p5, %p1556_p4 }
  0x4c   :  { %1564 = shalt.err (!%p1561_p6)
}
  0x4d   :  { %s1565_s23 = scalar_lea.vmem %s50_s26, 16  ;;  %s1569_s25 = scalar_lea.vmem %s50_s26, 32 }
  0x4e   :  { %p1566_p7 = scmp.ne.s32.totalorder %s50_s26, %s1565_s23  ;;  %p1570_p8 = scmp.lt.s32.totalorder %s50_s26, %s50_s26 }
  0x4f   :  { %p1571_p9 = scmp.lt.s32.totalorder %s1569_s25, %s1565_s23 }
  0x51   :  { %p1572_p10 = por %p1571_p9, %p1570_p8 }
  0x53   :  { %p1573_p11 = pnand %p1572_p10, %p1566_p7 }
  0x55   :  { %1576 = shalt.err (!%p1573_p11)
}
  0x56   :  { %52 = dma.hbm_to_vmem [thread:$0]  %s2101_s2, 16, %s50_s26, [#allocation7]  }
  0x57   :  { %s1662_s18 = smov [#allocation11]   ;;  %s1663_s27 = smov [#allocation14]  }
  0x58   :  { %s71_s24 = sshll.u32 %s1662_s18, 4  ;;  %s92_s29 = sshll.u32 %s1663_s27, 4  ;;  %s72_s24 = int_to_ptr.vmem [resolvable:$true] %s71_s24  ;;  %s93_s29 = int_to_ptr.vmem [resolvable:$true] %s92_s29 }
  0x59   :  { %s1577_s9 = scalar_lea.hbm %s2103_s4, 16 }
  0x5a   :  { %p1578_p12 = scmp.ne.s32.totalorder %s2103_s4, %s1577_s9  ;;  %p1581_p13 = scmp.lt.u32.totalorder %s1577_s9, %s2103_s4 }
  0x5c   :  { %p1583_p0 = pnand %p1581_p13, %p1578_p12 }
  0x5e   :  { %1586 = shalt.err (!%p1583_p0)
}
  0x5f   :  { %s1587_s2 = scalar_lea.vmem %s72_s24, 16  ;;  %s1591_s26 = scalar_lea.vmem %s72_s24, 32 }
  0x60   :  { %p1588_p1 = scmp.ne.s32.totalorder %s72_s24, %s1587_s2  ;;  %p1592_p2 = scmp.lt.s32.totalorder %s72_s24, %s72_s24 }
  0x61   :  { %p1593_p3 = scmp.lt.s32.totalorder %s1591_s26, %s1587_s2 }
  0x63   :  { %p1594_p4 = por %p1593_p3, %p1592_p2 }
  0x65   :  { %p1595_p5 = pnand %p1594_p4, %p1588_p1 }
  0x67   :  { %1598 = shalt.err (!%p1595_p5)
}
  0x68   :  { %74 = dma.hbm_to_vmem [thread:$0]  %s2103_s4, 16, %s72_s24, [#allocation10]  }
  0x69   :  { %s1599_s19 = scalar_lea.hbm %s2105_s6, 2048 }
  0x6a   :  { %p1600_p6 = scmp.ne.s32.totalorder %s2105_s6, %s1599_s19  ;;  %p1603_p7 = scmp.lt.u32.totalorder %s1599_s19, %s2105_s6 }
  0x6c   :  { %p1605_p8 = pnand %p1603_p7, %p1600_p6 }
  0x6e   :  { %1608 = shalt.err (!%p1605_p8)
}
  0x6f   :  { %s1609_s25 = scalar_lea.vmem %s93_s29, 2048  ;;  %p1614_p10 = scmp.lt.s32.totalorder %s93_s29, %s93_s29 }
  0x70   :  { %p1610_p9 = scmp.ne.s32.totalorder %s93_s29, %s1609_s25  ;;  %p1615_p11 = scmp.lt.s32.totalorder %s1609_s25, %s1609_s25 }
  0x72   :  { %p1616_p12 = por %p1615_p11, %p1614_p10 }
  0x74   :  { %p1617_p13 = pnand %p1616_p12, %p1610_p9 }
  0x76   :  { %1620 = shalt.err (!%p1617_p13)
}
  0x77   :  { %98 = dma.hbm_to_vmem [thread:$0]  %s2105_s6, 2048, %s93_s29, [#allocation13], %s1658_s3, %s1658_s3, %s1659_s30  }
  0x78   :  { %1643 = dma.done.wait [#allocation4], 768  }
  0x79   :  { %1644 = vsyncadd [#allocation4], 4294966528 }
  0x7a   :  { %1645 = dma.done.wait [#allocation7], 1040  }
  0x7b   :  { %1646 = vsyncadd [#allocation7], 4294966256 }
  0x7c   :  { %1647 = dma.done.wait [#allocation10], 1040  }
  0x7d   :  { %1648 = vsyncadd [#allocation10], 4294966256 }
  0x7e   :  { %1649 = dma.done.wait [#allocation13], 2432  }
  0x7f   :  { %1650 = vsyncadd [#allocation13], 4294964864  ;;  %v1445_v0 = vld [vmem:[#allocation6] sm:$0xff]   ;;  %v1446_v1 = vld [vmem:[#allocation6 + $0x8] sm:$0xff]   ;;  %vm372_vm0 = vcmask 785408   ;;  %v1664_v25 = vmov 0  }
  0x80   :  { %1262 = vmatprep.subr.bf16.mxu0 %v1445_v0  ;;  %v1447_v2 = vld [vmem:[#allocation6 + $0x10] sm:$0xff]   ;;  %v1448_v3 = vld [vmem:[#allocation6 + $0x18] sm:$0xff]   ;;  %v1449_v5 = vld [vmem:[#allocation6 + $0x20] sm:$0xff]   ;;  %1443 = vset.pattern.permute.xlu1 %v1664_v25  ;;  %s149_s18 = sadd.f32 1.0, %s2106_s7  ;;  %s1665_s7 = smov [#allocation15]  }
  0x81   :  { %1263 = vmatpush3.bf16.msra.mxu0 %v1445_v0  ;;  %v1453_v4 = vld [vmem:[#allocation3] sm:$0xff]   ;;  %v1450_v6 = vld [vmem:[#allocation6 + $0x28] sm:$0xff]   ;;  %v1452_v13 = vld [vmem:[#allocation6 + $0x38] sm:$0xff]   ;;  %s1123_s24 = sshll.u32 %s1665_s7, 4  ;;  %s1124_s24 = int_to_ptr.vmem [resolvable:$true] %s1123_s24 }
  0x82   :  { %1264 = vmatprep.subr.bf16.mxu0 %v1446_v1  ;;  %1278 = vmatprep.mubr.bf16.mxu0 %v1453_v4  ;;  %v123_v7 = vld [vmem:[#allocation12] sm:$0xff]  ;;  %v124_v9 = vld [vmem:[#allocation12 + $0x8] sm:$0xff]  ;;  %v125_v15 = vld [vmem:[#allocation12 + $0x10] sm:$0xff]  ;;  %s1621_s27 = scalar_lea.vmem %s1124_s24, 1536  ;;  %p1626_p1 = scmp.lt.s32.totalorder %s1124_s24, %s1124_s24 }
  0x83   :  { %v1817_v8 = vunpack.c.l.s8.bf16 %v123_v7  ;;  %v1820_v10 = vunpack.c.h.s8.bf16 %v123_v7  ;;  %v1451_v11 = vld [vmem:[#allocation6 + $0x30] sm:$0xff]   ;;  %v1823_v12 = vunpack.c.l.s8.bf16 %v124_v9  ;;  %v1826_v14 = vunpack.c.h.s8.bf16 %v124_v9  ;;  %v1454_v17 = vld [vmem:[#allocation3 + $0x8] sm:$0xff]   ;;  %v1455_v18 = vld [vmem:[#allocation3 + $0x10] sm:$0xff]   ;;  %p1622_p0 = scmp.ne.s32.totalorder %s1124_s24, %s1621_s27  ;;  %p1627_p2 = scmp.lt.s32.totalorder %s1621_s27, %s1621_s27 }
  0x84   :  { %v1829_v16 = vunpack.c.l.s8.bf16 %v125_v15  ;;  %v1832_v19 = vunpack.c.h.s8.bf16 %v125_v15  ;;  %v1456_v20 = vld [vmem:[#allocation3 + $0x18] sm:$0xff]   ;;  %v1457_v21 = vld [vmem:[#allocation3 + $0x20] sm:$0xff]   ;;  %v1458_v22 = vld [vmem:[#allocation3 + $0x28] sm:$0xff]  }
  0x85   :  { %1265 = vmatpush3.bf16.msra.mxu0 %v1446_v1  ;;  %356 = vxpose.xlu0.c.b16.start [1/6] (short) %v1817_v8, 128  ;;  %v132_v24 = vld [vmem:[#allocation14] sm:$0xff]  ;;  %v133_v26 = vld [vmem:[#allocation14 + $0x8] sm:$0xff]  ;;  %v134_v27 = vld [vmem:[#allocation14 + $0x10] sm:$0xff]  ;;  %p1628_p3 = por %p1627_p2, %p1626_p1 }
  0x86   :  { %1266 = vmatprep.subr.bf16.mxu0 %v1447_v2  ;;  %496 = vperm.xlu1 %1443, %v132_v24   ;;  %v135_v28 = vld [vmem:[#allocation14 + $0x18] sm:$0xff]  ;;  %v138_v29 = vld [vmem:[#allocation14 + $0x30] sm:$0xff]  ;;  %v144_v30 = vld [vmem:[#allocation14 + $0x60] sm:$0xff] }
  0x87   :  { %v136_v31 = vld [vmem:[#allocation14 + $0x20] sm:$0xff]  ;;  %v146_v32 = vld [vmem:[#allocation14 + $0x70] sm:$0xff]  ;;  %v137_v33 = vld [vmem:[#allocation14 + $0x28] sm:$0xff]  ;;  %p1629_p4 = pnand %p1628_p3, %p1622_p0 }
  0x88   :  { %v139_v34 = vld [vmem:[#allocation14 + $0x38] sm:$0xff]  ;;  %v140_v35 = vld [vmem:[#allocation14 + $0x40] sm:$0xff]  ;;  %v141_v36 = vld [vmem:[#allocation14 + $0x48] sm:$0xff] }
  0x89   :  { %1267 = vmatpush3.bf16.msra.mxu0 %v1447_v2  ;;  %357 = vxpose.xlu0.c.b16.cont [2/6] (short) %v1820_v10, 128  ;;  %v142_v37 = vld [vmem:[#allocation14 + $0x50] sm:$0xff]  ;;  %v143_v38 = vld [vmem:[#allocation14 + $0x58] sm:$0xff]  ;;  %v145_v39 = vld [vmem:[#allocation14 + $0x68] sm:$0xff] }
  0x8a   :  { %1268 = vmatprep.subr.bf16.mxu0 %v1448_v3  ;;  %501 = vperm.xlu1 %1443, %v133_v26   ;;  %v147_v40 = vld [vmem:[#allocation14 + $0x78] sm:$0xff]  ;;  %v1138_v42 = vld [vmem:[#allocation8] ss:$0 sm:$0xff]  ;;  %v1463_v26 = vld [vmem:[#allocation9 + $0x20] sm:$0xff]  }
  0x8b   :  { %v1461_v24 = vld [vmem:[#allocation9 + $0x10] sm:$0xff]  }
  0x8d   :  { %1269 = vmatpush3.bf16.msra.mxu0 %v1448_v3  ;;  %358 = vxpose.xlu0.c.b16.cont [3/6] (short) %v1823_v12, 128 }
  0x8e   :  { %1270 = vmatprep.subr.bf16.mxu0 %v1449_v5  ;;  %506 = vperm.xlu1 %1443, %v134_v27   ;;  %v1464_v27 = vld [vmem:[#allocation9 + $0x28] sm:$0xff]  }
  0x91   :  { %1271 = vmatpush3.bf16.msra.mxu0 %v1449_v5  ;;  %359 = vxpose.xlu0.c.b16.cont [4/6] (short) %v1826_v14, 128 }
  0x92   :  { %1272 = vmatprep.subr.bf16.mxu0 %v1450_v6  ;;  %511 = vperm.xlu1 %1443, %v135_v28  }
  0x95   :  { %1273 = vmatpush3.bf16.msra.mxu0 %v1450_v6  ;;  %360 = vxpose.xlu0.c.b16.cont [5/6] (short) %v1829_v16, 128 }
  0x96   :  { %1274 = vmatprep.subr.bf16.mxu0 %v1451_v11  ;;  %516 = vperm.xlu1 %1443, %v136_v31  }
  0x99   :  { %1275 = vmatpush3.bf16.msra.mxu0 %v1451_v11  ;;  %361 = vxpose.xlu0.c.b16.end [6/6] (short) %v1832_v19, 128 }
  0x9a   :  { %1276 = vmatprep.subr.bf16.mxu0 %v1452_v13  ;;  %521 = vperm.xlu1 %1443, %v137_v33  }
  0x9d   :  { %1277 = vmatpush3.bf16.msra.mxu0 %v1452_v13 }
  0x9e   :  { %531 = vperm.xlu1 %1443, %v139_v34  }
  0xa0   :  { %1279 = vmatmul.mubr.bf16.vlgmr.msra.gmra.mrb[0].mxu0 %v1454_v17 }
  0xa1   :  { %1282 = vmatprep.mubr.bf16.mxu0 %v1455_v18 }
  0xa2   :  { %1444 = vset.pattern.permute.xlu0 %v1664_v25  ;;  %536 = vperm.xlu1 %1443, %v140_v35   ;;  %v1462_v25 = vld [vmem:[#allocation9 + $0x18] sm:$0xff]  }
  0xa6   :  { %541 = vperm.xlu1 %1443, %v141_v36  }
  0xa8   :  { %1283 = vmatmul.mubr.bf16.gmra.mrb[4].mxu0 %v1456_v20 }
  0xa9   :  { %1286 = vmatprep.mubr.bf16.mxu0 %v1457_v21  ;;  %v1459_v21 = vld [vmem:[#allocation9] sm:$0xff]  }
  0xaa   :  { %526 = vperm.xlu0 %1444, %v138_v29   ;;  %546 = vperm.xlu1 %1443, %v142_v37  }
  0xab   :  { %1346 = vmatprep.subr.bf16.mxu0 %v1459_v21 }
  0xac   :  { %1347 = vmatpush3.bf16.msra.mxu0 %v1459_v21 }
  0xae   :  { %556 = vperm.xlu0 %1444, %v144_v30   ;;  %551 = vperm.xlu1 %1443, %v143_v38  }
  0xb0   :  { %1287 = vmatmul.mubr.bf16.gmra.mrb[8].mxu0 %v1458_v22  ;;  %v1460_v22 = vld [vmem:[#allocation9 + $0x8] sm:$0xff]  }
  0xb1   :  { %1348 = vmatprep.subr.bf16.mxu0 %v1460_v22 }
  0xb2   :  { %566 = vperm.xlu0 %1444, %v146_v32   ;;  %561 = vperm.xlu1 %1443, %v145_v39  }
  0xb3   :  { %1349 = vmatpush3.bf16.msra.mxu0 %v1460_v22 }
  0xb4   :  { %1350 = vmatprep.subr.bf16.mxu0 %v1461_v24 }
  0xb6   :  { %571 = vperm.xlu1 %1443, %v147_v40  }
  0xb7   :  { %1351 = vmatpush3.bf16.msra.mxu0 %v1461_v24 }
  0xb8   :  { %1352 = vmatprep.subr.bf16.mxu0 %v1462_v25 }
  0xbb   :  { %1353 = vmatpush3.bf16.msra.mxu0 %v1462_v25 }
  0xbc   :  { %1354 = vmatprep.subr.bf16.mxu0 %v1463_v26 }
  0xbf   :  { %1355 = vmatpush3.bf16.msra.mxu0 %v1463_v26 }
  0xc0   :  { %1356 = vmatprep.subr.bf16.mxu0 %v1464_v27 }
  0xc3   :  { %1357 = vmatpush3.bf16.msra.mxu0 %v1464_v27 }
  0xeb   :  { %v1835_v23 = vpop.trf.xlu0 }
  0xec   :  { %1302 = vmatprep.mubr.msk.bf16.mxu1 %vm372_vm0, %v1835_v23 }
  0xef   :  { %v1863_v63 = vpop.trf.xlu0 }
  0xf3   :  { %v1877_v11 = vpop.trf.xlu0 }
  0xf7   :  { %v1879_v13 = vpop.trf.xlu0 }
  0xfb   :  { %v1885_v15 = vpop.trf.xlu0 }
  0xff   :  { %v1889_v17 = vpop.trf.xlu0 }
 0x103   :  { %v1893_v18 = vpop.trf.xlu0 }
 0x105   :  { %v1904_v28 = vpop.permute.xlu1 %496 }
 0x107   :  { %v1899_v20 = vpop.trf.xlu0 }
 0x109   :  { %v1906_v29 = vpop.permute.xlu1 %501 }
 0x10d   :  { %v1908_v30 = vpop.permute.xlu1 %506 }
 0x111   :  { %v1910_v31 = vpop.permute.xlu1 %511 }
 0x115   :  { %v1912_v32 = vpop.permute.xlu1 %516 }
 0x119   :  { %v1914_v33 = vpop.permute.xlu1 %521 }
 0x11d   :  { %v1916_v34 = vpop.permute.xlu1 %531 }
 0x121   :  { %v1918_v35 = vpop.permute.xlu1 %536 }
 0x125   :  { %v1920_v37 = vpop.permute.xlu1 %541 }
 0x173   :  { %v1280_v41 = vpop.f32.mrb[0].mxu0 }
 0x174   :  { %v303_v43 = vpop.f32.mrb[1].mxu0  ;;  %v1839_v45 = vadd.f32 %v1280_v41, %v1138_v42 }
 0x175   :  { %v1281_v44 = vpop.f32.mrb[2].mxu0  ;;  %v1843_v48 = vadd.f32 %v1138_v42, %v303_v43 }
 0x176   :  { %v1841_v46 = vadd.f32 %v1281_v44, %v1138_v42  ;;  %v306_v47 = vpop.f32.mrb[3].mxu0 }
 0x177   :  { %v1845_v49 = vadd.f32 %v1138_v42, %v306_v47 }
 0x178   :  { %v351_v50 = vpack.c.bf16 %v1841_v46, %v1839_v45 }
 0x179   :  { %v350_v51 = vpack.c.bf16 %v1845_v49, %v1843_v48 }
 0x17b   :  { %v1284_v52 = vpop.f32.mrb[4].mxu0  ;;  %1290 = vmatprep.subr.bf16.mxu1 %v350_v51 }
 0x17c   :  { %v319_v53 = vpop.f32.mrb[5].mxu0  ;;  %1291 = vmatpush3.bf16.msra.mxu1 %v350_v51  ;;  %v1851_v55 = vadd.f32 %v1284_v52, %v1138_v42  ;;  %v1926_v51 = vpop.permute.xlu1 %546 }
 0x17d   :  { %v1285_v54 = vpop.f32.mrb[6].mxu0  ;;  %1292 = vmatprep.subr.bf16.mxu1 %v351_v50  ;;  %v1855_v58 = vadd.f32 %v1138_v42, %v319_v53  ;;  %v1928_v52 = vpop.permute.xlu0 %526 }
 0x17e   :  { %v1853_v56 = vadd.f32 %v1285_v54, %v1138_v42  ;;  %v322_v57 = vpop.f32.mrb[7].mxu0 }
 0x17f   :  { %v1857_v59 = vadd.f32 %v1138_v42, %v322_v57 }
 0x180   :  { %v353_v60 = vpack.c.bf16 %v1853_v56, %v1851_v55  ;;  %1293 = vmatpush3.bf16.msra.mxu1 %v351_v50 }
 0x181   :  { %v352_v61 = vpack.c.bf16 %v1857_v59, %v1855_v58 }
 0x183   :  { %v1288_v62 = vpop.f32.mrb[8].mxu0  ;;  %1294 = vmatprep.subr.bf16.mxu1 %v352_v61 }
 0x184   :  { %v335_v0 = vpop.f32.mrb[9].mxu0  ;;  %1295 = vmatpush3.bf16.msra.mxu1 %v352_v61  ;;  %v1865_v2 = vadd.f32 %v1288_v62, %v1138_v42 }
 0x185   :  { %v1289_v1 = vpop.f32.mrb[10].mxu0  ;;  %1296 = vmatprep.subr.bf16.mxu1 %v353_v60  ;;  %v1869_v5 = vadd.f32 %v1138_v42, %v335_v0 }
 0x186   :  { %v1867_v3 = vadd.f32 %v1289_v1, %v1138_v42  ;;  %v338_v4 = vpop.f32.mrb[11].mxu0 }
 0x187   :  { %v1871_v6 = vadd.f32 %v1138_v42, %v338_v4  ;;  %v1934_v4 = vpop.permute.xlu1 %551 }
 0x188   :  { %v355_v7 = vpack.c.bf16 %v1867_v3, %v1865_v2  ;;  %1297 = vmatpush3.bf16.msra.mxu1 %v353_v60 }
 0x189   :  { %v354_v9 = vpack.c.bf16 %v1871_v6, %v1869_v5 }
 0x18b   :  { %1298 = vmatprep.subr.bf16.mxu1 %v354_v9  ;;  %v1936_v25 = vpop.permute.xlu1 %561 }
 0x18c   :  { %1299 = vmatpush3.bf16.msra.mxu1 %v354_v9 }
 0x18d   :  { %1300 = vmatprep.subr.bf16.mxu1 %v355_v7 }
 0x190   :  { %1301 = vmatpush3.bf16.msra.mxu1 %v355_v7 }
 0x193   :  { %1303 = vmatmul.mubr.msk.bf16.vlgmr.msra.gmra.mrb[0].mxu1 %vm372_vm0, %v1863_v63 }
 0x194   :  { %1306 = vmatprep.mubr.msk.bf16.mxu1 %vm372_vm0, %v1877_v11 }
 0x19b   :  { %1307 = vmatmul.mubr.msk.bf16.gmra.mrb[4].mxu1 %vm372_vm0, %v1879_v13 }
 0x19c   :  { %1310 = vmatprep.mubr.msk.bf16.mxu1 %vm372_vm0, %v1885_v15 }
 0x1a3   :  { %1311 = vmatmul.mubr.msk.bf16.gmra.mrb[8].mxu1 %vm372_vm0, %v1889_v17 }
 0x1a4   :  { %1314 = vmatprep.mubr.msk.bf16.mxu1 %vm372_vm0, %v1893_v18 }
 0x1ab   :  { %1315 = vmatmul.mubr.msk.bf16.gmra.mrb[12].mxu1 %vm372_vm0, %v1899_v20 }
 0x1ac   :  { %1334 = vmatprep.mubr.bf16.mxu1 %v1817_v8 }
 0x266   :  { %v1304_v36 = vpop.f32.mrb[0].mxu1 }
 0x267   :  { %v431_v38 = vpop.f32.mrb[1].mxu1  ;;  %v576_v40 = vmul.f32 %v1304_v36, %v1908_v30 }
 0x268   :  { %v1305_v39 = vpop.f32.mrb[2].mxu1  ;;  %v574_v43 = vmul.f32 %v1904_v28, %v431_v38  ;;  %v1940_v38 = vpop.permute.xlu0 %556 }
 0x269   :  { %v577_v41 = vmul.f32 %v1305_v39, %v1910_v31  ;;  %v434_v42 = vpop.f32.mrb[3].mxu1 }
 0x26a   :  { %v575_v44 = vmul.f32 %v1906_v29, %v434_v42 }
 0x26b   :  { %v591_v47 = vpack.c.bf16 %v577_v41, %v576_v40 }
 0x26c   :  { %v590_v50 = vpack.c.bf16 %v575_v44, %v574_v43  ;;  %v1944_v44 = vpop.permute.xlu1 %571 }
 0x26e   :  { %v1308_v53 = vpop.f32.mrb[4].mxu1  ;;  %1318 = vmatprep.subr.bf16.mxu1 %v590_v50 }
 0x26f   :  { %v447_v54 = vpop.f32.mrb[5].mxu1  ;;  %1319 = vmatpush3.bf16.msra.mxu1 %v590_v50  ;;  %v580_v60 = vmul.f32 %v1308_v53, %v1928_v52  ;;  %v1946_v50 = vpop.permute.xlu0 %566 }
 0x270   :  { %v1309_v57 = vpop.f32.mrb[6].mxu1  ;;  %1320 = vmatprep.subr.bf16.mxu1 %v591_v47  ;;  %v578_v0 = vmul.f32 %v1912_v32, %v447_v54 }
 0x271   :  { %v581_v61 = vmul.f32 %v1309_v57, %v1916_v34  ;;  %v450_v62 = vpop.f32.mrb[7].mxu1 }
 0x272   :  { %v579_v1 = vmul.f32 %v1914_v33, %v450_v62 }
 0x273   :  { %v593_v7 = vpack.c.bf16 %v581_v61, %v580_v60  ;;  %1321 = vmatpush3.bf16.msra.mxu1 %v591_v47 }
 0x274   :  { %v592_v9 = vpack.c.bf16 %v579_v1, %v578_v0 }
 0x276   :  { %v1312_v21 = vpop.f32.mrb[8].mxu1  ;;  %1322 = vmatprep.subr.bf16.mxu1 %v592_v9 }
 0x277   :  { %v463_v22 = vpop.f32.mrb[9].mxu1  ;;  %1323 = vmatpush3.bf16.msra.mxu1 %v592_v9  ;;  %v584_v26 = vmul.f32 %v1312_v21, %v1926_v51  ;;  %v1466_v9 = vld [vmem:[#allocation9 + $0x38] sm:$0xff]   ;;  %v1962_v21 = vstv %s149_s18 }
 0x278   :  { %v1313_v24 = vpop.f32.mrb[10].mxu1  ;;  %1324 = vmatprep.subr.bf16.mxu1 %v593_v7  ;;  %v582_v39 = vmul.f32 %v1918_v35, %v463_v22  ;;  %v682_v22 = vmul.f32 %v1962_v21, %v1839_v45 }
 0x279   :  { %v585_v27 = vmul.f32 %v1313_v24, %v1934_v4  ;;  %v466_v36 = vpop.f32.mrb[11].mxu1 }
 0x27a   :  { %v583_v40 = vmul.f32 %v1920_v37, %v466_v36  ;;  %v683_v36 = vmul.f32 %v1962_v21, %v1841_v46  ;;  %v684_v46 = vmul.f32 %v1962_v21, %v1855_v58 }
 0x27b   :  { %v595_v41 = vpack.c.bf16 %v585_v27, %v584_v26  ;;  %1325 = vmatpush3.bf16.msra.mxu1 %v593_v7  ;;  %v1465_v7 = vld [vmem:[#allocation9 + $0x30] sm:$0xff]   ;;  %v680_v26 = vmul.f32 %v1962_v21, %v1843_v48  ;;  %v686_v48 = vmul.f32 %v1962_v21, %v1851_v55 }
 0x27c   :  { %v594_v42 = vpack.c.bf16 %v583_v40, %v582_v39  ;;  %1358 = vmatprep.subr.bf16.mxu0 %v1465_v7 }
 0x27d   :  { %1359 = vmatpush3.bf16.msra.mxu0 %v1465_v7 }
 0x27e   :  { %v1316_v43 = vpop.f32.mrb[12].mxu1  ;;  %1326 = vmatprep.subr.bf16.mxu1 %v594_v42  ;;  %1360 = vmatprep.subr.bf16.mxu0 %v1466_v9 }
 0x27f   :  { %v479_v47 = vpop.f32.mrb[13].mxu1  ;;  %1327 = vmatpush3.bf16.msra.mxu1 %v594_v42  ;;  %v588_v54 = vmul.f32 %v1316_v43, %v1946_v50 }
 0x280   :  { %v1317_v53 = vpop.f32.mrb[14].mxu1  ;;  %1328 = vmatprep.subr.bf16.mxu1 %v595_v41  ;;  %v586_v61 = vmul.f32 %v1940_v38, %v479_v47 }
 0x281   :  { %v589_v57 = vmul.f32 %v1317_v53, %v1944_v44  ;;  %v482_v60 = vpop.f32.mrb[15].mxu1  ;;  %1361 = vmatpush3.bf16.msra.mxu0 %v1466_v9 }
 0x282   :  { %v587_v62 = vmul.f32 %v1936_v25, %v482_v60 }
 0x283   :  { %v597_v0 = vpack.c.bf16 %v589_v57, %v588_v54  ;;  %1329 = vmatpush3.bf16.msra.mxu1 %v595_v41  ;;  %v681_v41 = vmul.f32 %v1962_v21, %v1845_v49  ;;  %v687_v49 = vmul.f32 %v1962_v21, %v1853_v56 }
 0x284   :  { %v596_v1 = vpack.c.bf16 %v587_v62, %v586_v61 }
 0x286   :  { %1330 = vmatprep.subr.bf16.mxu1 %v596_v1 }
 0x287   :  { %1331 = vmatpush3.bf16.msra.mxu1 %v596_v1 }
 0x288   :  { %1332 = vmatprep.subr.bf16.mxu1 %v597_v0 }
 0x28b   :  { %1333 = vmatpush3.bf16.msra.mxu1 %v597_v0 }
 0x28e   :  { %1335 = vmatmul.mubr.bf16.vlgmr.msra.gmra.mrb[16].mxu1 %v1820_v10 }
 0x28f   :  { %1338 = vmatprep.mubr.bf16.mxu1 %v1823_v12 }
 0x296   :  { %1339 = vmatmul.mubr.bf16.gmra.mrb[20].mxu1 %v1826_v14 }
 0x297   :  { %1342 = vmatprep.mubr.bf16.mxu1 %v1829_v16 }
 0x29e   :  { %1343 = vmatmul.mubr.bf16.gmra.mrb[24].mxu1 %v1832_v19 }
 0x29f   :  { %1386 = vmatprep.mubr.msk.bf16.mxu1 %vm372_vm0, %v1835_v23 }
 0x361   :  { %v1336_v24 = vpop.f32.mrb[16].mxu1 }
 0x362   :  { %v694_v23 = vadd.f32 %v1336_v24, %v682_v22  ;;  %v632_v27 = vpop.f32.mrb[17].mxu1  ;;  %v685_v22 = vmul.f32 %v1962_v21, %v1857_v59  ;;  %v691_v59 = vmul.f32 %v1962_v21, %v1867_v3 }
 0x363   :  { %v692_v39 = vadd.f32 %v680_v26, %v632_v27  ;;  %v1337_v40 = vpop.f32.mrb[18].mxu1 }
 0x364   :  { %v695_v42 = vadd.f32 %v1337_v40, %v683_v36  ;;  %v635_v43 = vpop.f32.mrb[19].mxu1  ;;  %v706_v53 = vmax.f32 %v694_v23, 0.0  ;;  %v690_v40 = vmul.f32 %v1962_v21, %v1865_v2 }
 0x365   :  { %v693_v47 = vadd.f32 %v681_v41, %v635_v43  ;;  %v704_v45 = vmax.f32 %v692_v39, 0.0 }
 0x366   :  { %v707_v54 = vmax.f32 %v695_v42, 0.0  ;;  %v688_v42 = vmul.f32 %v1962_v21, %v1869_v5 }
 0x367   :  { %v705_v57 = vmax.f32 %v693_v47, 0.0 }
 0x368   :  { %v717_v60 = vpack.c.bf16 %v707_v54, %v706_v53 }
 0x369   :  { %v716_v61 = vpack.c.bf16 %v705_v57, %v704_v45  ;;  %v1340_v62 = vpop.f32.mrb[20].mxu1  ;;  %v689_v45 = vmul.f32 %v1962_v21, %v1871_v6 }
 0x36a   :  { %v698_v0 = vadd.f32 %v1340_v62, %v686_v48  ;;  %v648_v1 = vpop.f32.mrb[21].mxu1 }
 0x36b   :  { %v696_v7 = vadd.f32 %v684_v46, %v648_v1  ;;  %v1341_v9 = vpop.f32.mrb[22].mxu1  ;;  %1362 = vmatprep.mubr.bf16.mxu0 %v716_v61  ;;  %v1161_v1 = vld [vmem:[#allocation11] ss:$0 sm:$0xff] }
 0x36c   :  { %v699_v24 = vadd.f32 %v1341_v9, %v687_v49  ;;  %v651_v26 = vpop.f32.mrb[23].mxu1  ;;  %1363 = vmatmul.mubr.bf16.vlgmr.msra.gmra.mrb[12].mxu0 %v717_v60  ;;  %v710_v23 = vmax.f32 %v698_v0, 0.0 }
 0x36d   :  { %v697_v55 = vadd.f32 %v685_v22, %v651_v26  ;;  %v708_v36 = vmax.f32 %v696_v7, 0.0 }
 0x36e   :  { %v711_v27 = vmax.f32 %v699_v24, 0.0 }
 0x36f   :  { %v709_v39 = vmax.f32 %v697_v55, 0.0 }
 0x370   :  { %v719_v58 = vpack.c.bf16 %v711_v27, %v710_v23 }
 0x371   :  { %v718_v41 = vpack.c.bf16 %v709_v39, %v708_v36  ;;  %v1344_v56 = vpop.f32.mrb[24].mxu1 }
 0x372   :  { %v702_v43 = vadd.f32 %v1344_v56, %v690_v40  ;;  %v664_v47 = vpop.f32.mrb[25].mxu1 }
 0x373   :  { %v700_v53 = vadd.f32 %v688_v42, %v664_v47  ;;  %v1345_v54 = vpop.f32.mrb[26].mxu1  ;;  %1366 = vmatprep.mubr.bf16.mxu0 %v718_v41 }
 0x374   :  { %v703_v57 = vadd.f32 %v1345_v54, %v691_v59  ;;  %v667_v60 = vpop.f32.mrb[27].mxu1  ;;  %1367 = vmatmul.mubr.bf16.gmra.mrb[16].mxu0 %v719_v58  ;;  %v714_v48 = vmax.f32 %v702_v43, 0.0 }
 0x375   :  { %v701_v2 = vadd.f32 %v689_v45, %v667_v60  ;;  %v712_v62 = vmax.f32 %v700_v53, 0.0 }
 0x376   :  { %v715_v61 = vmax.f32 %v703_v57, 0.0 }
 0x377   :  { %v713_v46 = vmax.f32 %v701_v2, 0.0 }
 0x378   :  { %v721_v5 = vpack.c.bf16 %v715_v61, %v714_v48 }
 0x379   :  { %v720_v0 = vpack.c.bf16 %v713_v46, %v712_v62 }
 0x37b   :  { %1370 = vmatprep.mubr.bf16.mxu0 %v720_v0 }
 0x37c   :  { %1371 = vmatmul.mubr.bf16.gmra.mrb[20].mxu0 %v721_v5 }
 0x37d   :  { %1418 = vmatprep.mubr.bf16.mxu0 %v1817_v8 }
 0x43f   :  { %v1364_v3 = vpop.f32.mrb[12].mxu0 }
 0x440   :  { %v827_v49 = vpop.f32.mrb[13].mxu0  ;;  %v1989_v9 = vadd.f32 %v1364_v3, %v1161_v1 }
 0x441   :  { %v1365_v7 = vpop.f32.mrb[14].mxu0  ;;  %v1993_v24 = vadd.f32 %v1161_v1, %v827_v49 }
 0x442   :  { %v1991_v6 = vadd.f32 %v1365_v7, %v1161_v1  ;;  %v830_v22 = vpop.f32.mrb[15].mxu0 }
 0x443   :  { %v1995_v26 = vadd.f32 %v1161_v1, %v830_v22 }
 0x444   :  { %v875_v55 = vpack.c.bf16 %v1991_v6, %v1989_v9 }
 0x445   :  { %v874_v23 = vpack.c.bf16 %v1995_v26, %v1993_v24 }
 0x447   :  { %v1368_v8 = vpop.f32.mrb[16].mxu0  ;;  %1374 = vmatprep.subr.bf16.mxu1 %v874_v23 }
 0x448   :  { %v843_v27 = vpop.f32.mrb[17].mxu0  ;;  %1375 = vmatpush3.bf16.msra.mxu1 %v874_v23  ;;  %v2001_v39 = vadd.f32 %v1368_v8, %v1161_v1 }
 0x449   :  { %v1369_v36 = vpop.f32.mrb[18].mxu0  ;;  %1376 = vmatprep.subr.bf16.mxu1 %v875_v55  ;;  %v2005_v41 = vadd.f32 %v1161_v1, %v843_v27 }
 0x44a   :  { %v2003_v58 = vadd.f32 %v1369_v36, %v1161_v1  ;;  %v846_v40 = vpop.f32.mrb[19].mxu0 }
 0x44b   :  { %v2007_v56 = vadd.f32 %v1161_v1, %v846_v40 }
 0x44c   :  { %v877_v42 = vpack.c.bf16 %v2003_v58, %v2001_v39  ;;  %1377 = vmatpush3.bf16.msra.mxu1 %v875_v55 }
 0x44d   :  { %v876_v43 = vpack.c.bf16 %v2007_v56, %v2005_v41 }
 0x44f   :  { %v1372_v47 = vpop.f32.mrb[20].mxu0  ;;  %1378 = vmatprep.subr.bf16.mxu1 %v876_v43 }
 0x450   :  { %v859_v59 = vpop.f32.mrb[21].mxu0  ;;  %1379 = vmatpush3.bf16.msra.mxu1 %v876_v43  ;;  %v2013_v54 = vadd.f32 %v1372_v47, %v1161_v1 }
 0x451   :  { %v1373_v53 = vpop.f32.mrb[22].mxu0  ;;  %1380 = vmatprep.subr.bf16.mxu1 %v877_v42  ;;  %v2017_v60 = vadd.f32 %v1161_v1, %v859_v59 }
 0x452   :  { %v2015_v45 = vadd.f32 %v1373_v53, %v1161_v1  ;;  %v862_v57 = vpop.f32.mrb[23].mxu0 }
 0x453   :  { %v2019_v2 = vadd.f32 %v1161_v1, %v862_v57 }
 0x454   :  { %v879_v48 = vpack.c.bf16 %v2015_v45, %v2013_v54  ;;  %1381 = vmatpush3.bf16.msra.mxu1 %v877_v42 }
 0x455   :  { %v878_v61 = vpack.c.bf16 %v2019_v2, %v2017_v60 }
 0x457   :  { %1382 = vmatprep.subr.bf16.mxu1 %v878_v61 }
 0x458   :  { %1383 = vmatpush3.bf16.msra.mxu1 %v878_v61 }
 0x459   :  { %1384 = vmatprep.subr.bf16.mxu1 %v879_v48 }
 0x45c   :  { %1385 = vmatpush3.bf16.msra.mxu1 %v879_v48 }
 0x45f   :  { %1387 = vmatmul.mubr.msk.bf16.vlgmr.msra.gmra.mrb[28].mxu1 %vm372_vm0, %v1863_v63 }
 0x460   :  { %1390 = vmatprep.mubr.msk.bf16.mxu1 %vm372_vm0, %v1877_v11 }
 0x467   :  { %1391 = vmatmul.mubr.msk.bf16.gmra.mrb[32].mxu1 %vm372_vm0, %v1879_v13 }
 0x468   :  { %1394 = vmatprep.mubr.msk.bf16.mxu1 %vm372_vm0, %v1885_v15 }
 0x46f   :  { %1395 = vmatmul.mubr.msk.bf16.gmra.mrb[36].mxu1 %vm372_vm0, %v1889_v17 }
 0x470   :  { %1398 = vmatprep.mubr.msk.bf16.mxu1 %vm372_vm0, %v1893_v18 }
 0x477   :  { %1399 = vmatmul.mubr.msk.bf16.gmra.mrb[40].mxu1 %vm372_vm0, %v1899_v20 }
 0x532   :  { %v1388_v62 = vpop.f32.mrb[28].mxu1 }
 0x533   :  { %v914_v63 = vpop.f32.mrb[29].mxu1  ;;  %v979_v11 = vmul.f32 %v1388_v62, %v1908_v30 }
 0x534   :  { %v1389_v46 = vpop.f32.mrb[30].mxu1  ;;  %v977_v0 = vmul.f32 %v914_v63, %v1904_v28  ;;  %v1086_v63 = vmul.f32 %v2005_v41, %v1962_v21 }
 0x535   :  { %v980_v5 = vmul.f32 %v1389_v46, %v1910_v31  ;;  %v917_v13 = vpop.f32.mrb[31].mxu1 }
 0x536   :  { %v978_v15 = vmul.f32 %v917_v13, %v1906_v29  ;;  %v1087_v13 = vmul.f32 %v2007_v56, %v1962_v21 }
 0x537   :  { %v994_v3 = vpack.c.bf16 %v980_v5, %v979_v11  ;;  %v1089_v11 = vmul.f32 %v2003_v58, %v1962_v21 }
 0x538   :  { %v993_v17 = vpack.c.bf16 %v978_v15, %v977_v0 }
 0x53a   :  { %v1392_v1 = vpop.f32.mrb[32].mxu1  ;;  %1402 = vmatprep.subr.bf16.mxu0 %v993_v17 }
 0x53b   :  { %v930_v18 = vpop.f32.mrb[33].mxu1  ;;  %1403 = vmatpush3.bf16.msra.mxu0 %v993_v17  ;;  %v983_v20 = vmul.f32 %v1392_v1, %v1928_v52  ;;  %v1090_v17 = vmul.f32 %v2017_v60, %v1962_v21 }
 0x53c   :  { %v1393_v49 = vpop.f32.mrb[34].mxu1  ;;  %1404 = vmatprep.subr.bf16.mxu0 %v994_v3  ;;  %v981_v31 = vmul.f32 %v930_v18, %v1912_v32  ;;  %v1093_v18 = vmul.f32 %v2015_v45, %v1962_v21 }
 0x53d   :  { %v984_v7 = vmul.f32 %v1393_v49, %v1916_v34  ;;  %v933_v30 = vpop.f32.mrb[35].mxu1 }
 0x53e   :  { %v982_v22 = vmul.f32 %v933_v30, %v1914_v33 }
 0x53f   :  { %v996_v28 = vpack.c.bf16 %v984_v7, %v983_v20  ;;  %1405 = vmatpush3.bf16.msra.mxu0 %v994_v3  ;;  %v1091_v20 = vmul.f32 %v2019_v2, %v1962_v21 }
 0x540   :  { %v995_v29 = vpack.c.bf16 %v982_v22, %v981_v31 }
 0x542   :  { %v1396_v55 = vpop.f32.mrb[36].mxu1  ;;  %1406 = vmatprep.subr.bf16.mxu0 %v995_v29 }
 0x543   :  { %v946_v23 = vpop.f32.mrb[37].mxu1  ;;  %1407 = vmatpush3.bf16.msra.mxu0 %v995_v29  ;;  %v987_v27 = vmul.f32 %v1396_v55, %v1926_v51 }
 0x544   :  { %v1397_v8 = vpop.f32.mrb[38].mxu1  ;;  %1408 = vmatprep.subr.bf16.mxu0 %v996_v28  ;;  %v985_v34 = vmul.f32 %v946_v23, %v1918_v35 }
 0x545   :  { %v988_v52 = vmul.f32 %v1397_v8, %v1934_v4  ;;  %v949_v36 = vpop.f32.mrb[39].mxu1 }
 0x546   :  { %v986_v32 = vmul.f32 %v949_v36, %v1920_v37 }
 0x547   :  { %v998_v40 = vpack.c.bf16 %v988_v52, %v987_v27  ;;  %1409 = vmatpush3.bf16.msra.mxu0 %v996_v28 }
 0x548   :  { %v997_v33 = vpack.c.bf16 %v986_v32, %v985_v34 }
 0x54a   :  { %v1400_v42 = vpop.f32.mrb[40].mxu1  ;;  %1410 = vmatprep.subr.bf16.mxu0 %v997_v33 }
 0x54b   :  { %v962_v43 = vpop.f32.mrb[41].mxu1  ;;  %1411 = vmatpush3.bf16.msra.mxu0 %v997_v33  ;;  %v991_v59 = vmul.f32 %v1400_v42, %v1946_v50 }
 0x54c   :  { %v1401_v47 = vpop.f32.mrb[42].mxu1  ;;  %1412 = vmatprep.subr.bf16.mxu0 %v998_v40  ;;  %v989_v4 = vmul.f32 %v962_v43, %v1940_v38 }
 0x54d   :  { %v992_v51 = vmul.f32 %v1401_v47, %v1944_v44  ;;  %v965_v53 = vpop.f32.mrb[43].mxu1  ;;  %v1082_v44 = vmul.f32 %v1993_v24, %v1962_v21 }
 0x54e   :  { %v990_v35 = vmul.f32 %v965_v53, %v1936_v25  ;;  %v1084_v25 = vmul.f32 %v1989_v9, %v1962_v21  ;;  %v1088_v9 = vmul.f32 %v2001_v39, %v1962_v21  ;;  %v1092_v39 = vmul.f32 %v2013_v54, %v1962_v21 }
 0x54f   :  { %v1000_v57 = vpack.c.bf16 %v992_v51, %v991_v59  ;;  %1413 = vmatpush3.bf16.msra.mxu0 %v998_v40 }
 0x550   :  { %v999_v37 = vpack.c.bf16 %v990_v35, %v989_v4 }
 0x552   :  { %1414 = vmatprep.subr.bf16.mxu0 %v999_v37 }
 0x553   :  { %1415 = vmatpush3.bf16.msra.mxu0 %v999_v37 }
 0x554   :  { %1416 = vmatprep.subr.bf16.mxu0 %v1000_v57 }
 0x557   :  { %1417 = vmatpush3.bf16.msra.mxu0 %v1000_v57 }
 0x55a   :  { %1419 = vmatmul.mubr.bf16.vlgmr.msra.gmra.mrb[24].mxu0 %v1820_v10  ;;  %v1085_v10 = vmul.f32 %v1991_v6, %v1962_v21 }
 0x55b   :  { %1422 = vmatprep.mubr.bf16.mxu0 %v1823_v12 }
 0x562   :  { %1423 = vmatmul.mubr.bf16.gmra.mrb[28].mxu0 %v1826_v14  ;;  %v1083_v14 = vmul.f32 %v1995_v26, %v1962_v21 }
 0x563   :  { %1426 = vmatprep.mubr.bf16.mxu0 %v1829_v16 }
 0x56a   :  { %1427 = vmatmul.mubr.bf16.gmra.mrb[32].mxu0 %v1832_v19 }
 0x62d   :  { %v1420_v38 = vpop.f32.mrb[24].mxu0 }
 0x62e   :  { %v1096_v50 = vadd.f32 %v1420_v38, %v1084_v25  ;;  %v1035_v48 = vpop.f32.mrb[25].mxu0 }
 0x62f   :  { %v1094_v61 = vadd.f32 %v1082_v44, %v1035_v48  ;;  %v1421_v12 = vpop.f32.mrb[26].mxu0 }
 0x630   :  { %1108 = vst [vmem:[#allocation15 + $0x10] sm:$0xff] %v1096_v50  ;;  %v1097_v16 = vadd.f32 %v1421_v12, %v1085_v10  ;;  %v1038_v19 = vpop.f32.mrb[27].mxu0 }
 0x631   :  { %1106 = vst [vmem:[#allocation15] sm:$0xff] %v1094_v61  ;;  %v1095_v62 = vadd.f32 %v1083_v14, %v1038_v19 }
 0x632   :  { %1109 = vst [vmem:[#allocation15 + $0x18] sm:$0xff] %v1097_v16 }
 0x633   :  { %1107 = vst [vmem:[#allocation15 + $0x8] sm:$0xff] %v1095_v62 }
 0x635   :  { %v1424_v24 = vpop.f32.mrb[28].mxu0 }
 0x636   :  { %v1100_v6 = vadd.f32 %v1424_v24, %v1088_v9  ;;  %v1051_v46 = vpop.f32.mrb[29].mxu0 }
 0x637   :  { %v1098_v26 = vadd.f32 %v1086_v63, %v1051_v46  ;;  %v1425_v5 = vpop.f32.mrb[30].mxu0 }
 0x638   :  { %1112 = vst [vmem:[#allocation15 + $0x30] sm:$0xff] %v1100_v6  ;;  %v1101_v0 = vadd.f32 %v1425_v5, %v1089_v11  ;;  %v1054_v15 = vpop.f32.mrb[31].mxu0 }
 0x639   :  { %1110 = vst [vmem:[#allocation15 + $0x20] sm:$0xff] %v1098_v26  ;;  %v1099_v3 = vadd.f32 %v1087_v13, %v1054_v15 }
 0x63a   :  { %1113 = vst [vmem:[#allocation15 + $0x38] sm:$0xff] %v1101_v0 }
 0x63b   :  { %1111 = vst [vmem:[#allocation15 + $0x28] sm:$0xff] %v1099_v3 }
 0x63d   :  { %v1428_v41 = vpop.f32.mrb[32].mxu0 }
 0x63e   :  { %v1104_v58 = vadd.f32 %v1428_v41, %v1092_v39  ;;  %v1067_v1 = vpop.f32.mrb[33].mxu0 }
 0x63f   :  { %v1102_v56 = vadd.f32 %v1090_v17, %v1067_v1  ;;  %v1429_v49 = vpop.f32.mrb[34].mxu0 }
 0x640   :  { %1116 = vst [vmem:[#allocation15 + $0x50] sm:$0xff] %v1104_v58  ;;  %v1105_v7 = vadd.f32 %v1429_v49, %v1093_v18  ;;  %v1070_v30 = vpop.f32.mrb[35].mxu0 }
 0x641   :  { %1114 = vst [vmem:[#allocation15 + $0x40] sm:$0xff] %v1102_v56  ;;  %v1103_v54 = vadd.f32 %v1091_v20, %v1070_v30 }
 0x642   :  { %1117 = vst [vmem:[#allocation15 + $0x58] sm:$0xff] %v1105_v7 }
 0x643   :  { %1115 = vst [vmem:[#allocation15 + $0x48] sm:$0xff] %v1103_v54 }
 0x644   :  { %1632 = shalt.err (!%p1629_p4)
}
 0x645   :  { %s1633_s28 = scalar_lea.hbm %s2107_s8, 1536 }
 0x646   :  { %p1634_p5 = scmp.ne.s32.totalorder %s2107_s8, %s1633_s28  ;;  %p1637_p6 = scmp.lt.u32.totalorder %s1633_s28, %s2107_s8 }
 0x648   :  { %p1639_p7 = pnand %p1637_p6, %p1634_p5 }
 0x64a   :  { %1642 = shalt.err (!%p1639_p7)
}
 0x64b   :  { %1129 = dma.vmem_to_hbm [thread:$0]  %s1124_s24, 1536, %s2107_s8, [#allocation5], %s1658_s3, %s1658_s3, %s1659_s30  }
 0x64c   :  { %1651 = dma.done.wait [#allocation5], 1536  }
 0x64d   :  { %1652 = vsyncadd [#allocation5], 4294965760 }
 0x64e   :  { %1133 = vsyncpa [#allocation4], 1 }
 0x64f   :  { %1134 = vsyncpa [#allocation7], 1 }
 0x650   :  { %1135 = vsyncpa [#allocation10], 1 }
 0x651   :  { %1136 = vsyncpa [#allocation13], 1 }
 0x652   :  { %1137 = vsyncpa [#allocation5], 1 }

</bundles_post_ra>
